<compile_context>
chip_gen: v7x
topology: tpu7x:2x2x1
jax: 0.10.0
libtpu: 0.0.40
codegen_flags: <defaults>
</compile_context>

<pallas_src>
import math

import jax
import jax.numpy as jnp
from jax.experimental import pallas as pl
from jax.experimental.pallas import tpu as pltpu


def _simple_attention_kernel(qk_ref, vm_ref, o_ref):
    # qk_ref : (2, Bp, nh, H)  stacked lane-dense q' and k'  (q'[b,i,c] at [0,b,c,i])
    # vm_ref : (2, H, H)       [0] = v, [1] = additive attention mask (f32)
    # o_ref  : (Bp*H, H)       o[b*H + i, j] = attention_output[b, i, j]
    q = qk_ref[0].astype(jnp.float32)              # (Bp, nh, H)
    k = qk_ref[1].astype(jnp.float32)              # (Bp, nh, H)
    Bp, nh, H = q.shape

    # Batched QK^T with both operands lane-dense: contract the head dim (dim 1)
    # of both operands (einsum 'bci,bcj->bij'):
    #   s[b, i, j] = sum_c q'[b, i, c] * k'[b, j, c]
    s = jax.lax.dot_general(
        q, k,
        dimension_numbers=(((1,), (1,)), ((0,), (0,))),
        preferred_element_type=jnp.float32)        # (Bp, H, H)
    s = s * jnp.float32(1.0 / math.sqrt(nh)) + vm_ref[1][None, :, :]

    # Numerically-stable softmax along the last (lane) axis.  Exact divide on
    # the (Bp, H, 1) row sums -- 256 values, essentially free.
    s_max = jnp.max(s, axis=-1, keepdims=True)
    p = jnp.exp(s - s_max)
    denom = jnp.sum(p, axis=-1, keepdims=True)
    w = p * (jnp.float32(1.0) / denom)             # (Bp, H, H)

    # All Bp batches of (w @ v) fused into ONE 2-D NN MXU matmul.
    # (Bp, H, H) -> (Bp*H, H) only merges leading dims (last dim unchanged),
    # which is a no-op relayout.
    w2d = w.reshape(Bp * H, H)
    out2d = jnp.dot(w2d, vm_ref[0].astype(jnp.float32),
                    preferred_element_type=jnp.float32)   # (Bp*H, H)
    o_ref[...] = out2d.astype(o_ref.dtype)


def simple_attention(q, k, v, attn_mask, num_heads):
    """Pallas implementation of SimpleAttention.forward."""
    B, S, H = q.shape
    assert (B * S * H) % (H * num_heads) == 0
    # PyTorch `attn_weight @ v` only type-checks when v broadcasts to
    # (Bp, H, H), i.e. B == 1 and S == H.
    assert B == 1 and S == H, "forward only type-checks when B == 1 and S == H"

    # q.view(-1, h, nh), then swap to the lane-dense (Bp, nh, H) layout.
    # Wrapper-side layout plumbing on 4 KiB arrays (cheap XLA ops).
    q_d = jnp.swapaxes(q.reshape(-1, H, num_heads), 1, 2)     # (Bp, nh, H)
    k_d = jnp.swapaxes(k.reshape(-1, H, num_heads), 1, 2)     # (Bp, nh, H)
    Bp = q_d.shape[0]

    qk = jnp.stack([q_d, k_d], axis=0)                        # (2, Bp, nh, H)
    vm = jnp.stack(
        [v.reshape(H, H).astype(jnp.float32),
         jnp.broadcast_to(attn_mask, (1, H, H)).reshape(H, H).astype(jnp.float32)],
        axis=0)                                               # (2, H, H)

    out2d = pl.pallas_call(
        _simple_attention_kernel,
        out_shape=jax.ShapeDtypeStruct((Bp * H, H), q.dtype),
        in_specs=[
            pl.BlockSpec(memory_space=pltpu.MemorySpace.VMEM),  # stacked q'/k'
            pl.BlockSpec(memory_space=pltpu.MemorySpace.VMEM),  # stacked v / mask
        ],
        out_specs=pl.BlockSpec(memory_space=pltpu.MemorySpace.VMEM),
    )(qk, vm)

    # Row-major (Bp*H, H) -> (-1, H*nh): a zero-cost bitcast (no HBM pass,
    # unlike the transpose this replaces).
    return out2d.reshape(-1, H * num_heads)


def _reference(q, k, v, attn_mask, num_heads):
    """Pure-JAX mirror of the PyTorch forward, for verification."""
    B, S, H = q.shape
    qr = q.reshape(-1, H, num_heads)
    kr = k.reshape(-1, H, num_heads)
    w = jnp.einsum("bic,bjc->bij", qr, kr) / jnp.sqrt(jnp.float32(num_heads))
    w = w + attn_mask
    w = jax.nn.softmax(w, axis=-1)
    out = jnp.einsum("bik,kj->bij", w, v.reshape(H, H))
    return out.reshape(-1, H * num_heads)


if __name__ == "__main__":
    B, S, H, NUM_HEADS = 1, 32, 32, 4   # small, self-consistent shapes

    key = jax.random.PRNGKey(0)
    kq, kk, kv = jax.random.split(key, 3)
    q = jax.random.normal(kq, (B, S, H), dtype=jnp.float32)
    k = jax.random.normal(kk, (B, S, H), dtype=jnp.float32)
    v = jax.random.normal(kv, (B, S, H), dtype=jnp.float32)
    attn_mask = jnp.ones((1, S, H), dtype=jnp.float32)  # like the torch.ones mask

    fn = jax.jit(simple_attention, static_argnums=(4,))
    out = jax.block_until_ready(fn(q, k, v, attn_mask, NUM_HEADS))

    ref = _reference(q, k, v, attn_mask, NUM_HEADS)
    Bp = (B * S * H) // (H * NUM_HEADS)
    expected_shape = (Bp * H * H // (H * NUM_HEADS), H * NUM_HEADS)   # (64, 128)
    assert out.shape == expected_shape, (out.shape, expected_shape)
    assert ref.shape == expected_shape, (ref.shape, expected_shape)
    max_err = float(jnp.max(jnp.abs(out - ref)))
    assert jnp.allclose(out, ref, atol=1e-3, rtol=1e-3), f"mismatch vs reference: {max_err}"

    print("KERNEL_OK")
</pallas_src>

<mosaic_0001>
module attributes {stable_mosaic.version = 11 : i64} {
  func.func @_simple_attention_kernel(%arg0: memref<2x8x4x32xf32, #tpu.memory_space<vmem>>, %arg1: memref<2x32x32xf32, #tpu.memory_space<vmem>>, %arg2: memref<256x32xf32, #tpu.memory_space<vmem>>) attributes {dimension_semantics = [], scalar_prefetch = 0 : i64, scratch_operands = 0 : i64, tpu.core_type = #tpu.core_type<tc>} {
    %c0 = arith.constant 0 : index
    %c0_0 = arith.constant 0 : index
    %c0_1 = arith.constant 0 : index
    %c0_2 = arith.constant 0 : index
    %0 = vector.load %arg0[%c0, %c0_0, %c0_1, %c0_2] : memref<2x8x4x32xf32, #tpu.memory_space<vmem>>, vector<1x8x4x32xf32>
    %1 = vector.shape_cast %0 : vector<1x8x4x32xf32> to vector<8x4x32xf32>
    %c1 = arith.constant 1 : index
    %c0_3 = arith.constant 0 : index
    %c0_4 = arith.constant 0 : index
    %c0_5 = arith.constant 0 : index
    %2 = vector.load %arg0[%c1, %c0_3, %c0_4, %c0_5] : memref<2x8x4x32xf32, #tpu.memory_space<vmem>>, vector<1x8x4x32xf32>
    %3 = vector.shape_cast %2 : vector<1x8x4x32xf32> to vector<8x4x32xf32>
    %cst = arith.constant dense<0.000000e+00> : vector<8x32x32xf32>
    %4 = tpu.matmul %1, %3, %cst {dimension_numbers = #tpu.dot_dimension_numbers<[1], [1], [2], [2], [0, 0, 0, 2, 1, 2], [0], [0]>} : vector<8x4x32xf32>, vector<8x4x32xf32>, vector<8x32x32xf32> -> vector<8x32x32xf32>
    %cst_6 = arith.constant 5.000000e-01 : f32
    %5 = vector.broadcast %cst_6 : f32 to vector<8x32x32xf32>
    %6 = arith.mulf %4, %5 : vector<8x32x32xf32>
    %c1_7 = arith.constant 1 : index
    %c0_8 = arith.constant 0 : index
    %c0_9 = arith.constant 0 : index
    %7 = vector.load %arg1[%c1_7, %c0_8, %c0_9] : memref<2x32x32xf32, #tpu.memory_space<vmem>>, vector<1x32x32xf32>
    %8 = vector.shape_cast %7 : vector<1x32x32xf32> to vector<32x32xf32>
    %9 = vector.shape_cast %8 : vector<32x32xf32> to vector<1x32x32xf32>
    %10 = vector.broadcast %9 : vector<1x32x32xf32> to vector<8x32x32xf32>
    %11 = arith.addf %6, %10 : vector<8x32x32xf32>
    %cst_10 = arith.constant dense<0xFF800000> : vector<8x32xf32>
    %12 = vector.multi_reduction <maximumf>, %11, %cst_10 [2] : vector<8x32x32xf32> to vector<8x32xf32>
    %13 = vector.shape_cast %12 : vector<8x32xf32> to vector<8x32x1xf32>
    %14 = vector.broadcast %13 : vector<8x32x1xf32> to vector<8x32x32xf32>
    %15 = arith.subf %11, %14 : vector<8x32x32xf32>
    %16 = math.exp %15 : vector<8x32x32xf32>
    %cst_11 = arith.constant dense<0.000000e+00> : vector<8x32xf32>
    %17 = vector.multi_reduction <add>, %16, %cst_11 [2] : vector<8x32x32xf32> to vector<8x32xf32>
    %18 = vector.shape_cast %17 : vector<8x32xf32> to vector<8x32x1xf32>
    %cst_12 = arith.constant 1.000000e+00 : f32
    %19 = vector.broadcast %cst_12 : f32 to vector<8x32x1xf32>
    %20 = arith.divf %19, %18 : vector<8x32x1xf32>
    %21 = vector.broadcast %20 : vector<8x32x1xf32> to vector<8x32x32xf32>
    %22 = arith.mulf %16, %21 : vector<8x32x32xf32>
    %23 = vector.shape_cast %22 : vector<8x32x32xf32> to vector<256x32xf32>
    %c0_13 = arith.constant 0 : index
    %c0_14 = arith.constant 0 : index
    %c0_15 = arith.constant 0 : index
    %24 = vector.load %arg1[%c0_13, %c0_14, %c0_15] : memref<2x32x32xf32, #tpu.memory_space<vmem>>, vector<1x32x32xf32>
    %25 = vector.shape_cast %24 : vector<1x32x32xf32> to vector<32x32xf32>
    %cst_16 = arith.constant dense<0.000000e+00> : vector<256x32xf32>
    %26 = tpu.matmul %23, %25, %cst_16 {dimension_numbers = #tpu.dot_dimension_numbers<[1], [0], [0], [1], [0, 0, 1, 1], [], []>} : vector<256x32xf32>, vector<32x32xf32>, vector<256x32xf32> -> vector<256x32xf32>
    %c0_17 = arith.constant 0 : index
    %c0_18 = arith.constant 0 : index
    %27 = vector.load %arg2[%c0_17, %c0_18] : memref<256x32xf32, #tpu.memory_space<vmem>>, vector<256x32xf32>
    tpu.vector_store %arg2[%c0_17, %c0_18], %26 {strides = array<i32>} : memref<256x32xf32, #tpu.memory_space<vmem>>, vector<256x32xf32>,
    return
  }
}

</mosaic_0001>

<bundles_post_ra>
// kernel: simple_attention.1
= control target key start
LH: loop header
LB: loop body
LE: loop exit
PB: predicated region body
PF: predicated region fallthrough
CT: control target
= control target key end

     0   :  { %vm73_vm0 = vcmask 1043456   ;;  %vm60_vm1 = vcmask 31744   ;;  %vm1155_vm2 = vcmask 261120   ;;  %s2989_s0 = inlined_call_operand.vmem [shape: f32[2,8,4,32], index: 0, kind: input, shape index: {}]   ;;  %s2990_s1 = inlined_call_operand.vmem [shape: f32[2,32,32], index: 1, kind: input, shape index: {}]   ;;  %s2991_s2 = inlined_call_operand.vmem [shape: f32[256,32], index: 2, kind: output, shape index: {}]  }
   0x1   :  { %v11_v0 = vld [vmem:[%s2989_s0] sm:$0xf]  ;;  %v13_v1 = vld [vmem:[%s2989_s0 + $0x8] sm:$0xf]  ;;  %v12_v3 = vld [vmem:[%s2989_s0 + $0x4] sm:$0xf] }
   0x2   :  { %28 = vxpose.xlu0.b32.start.end [1/1] (short) (narrow) %v11_v0, 32  ;;  %294 = vxpose.xlu1.b32.start.end [1/1] (short) (narrow) %v13_v1, 32  ;;  %v1901_v2 = vld [vmem:[%s2989_s0 + $0x20] sm:$0xf]  ;;  %v14_v4 = vld [vmem:[%s2989_s0 + $0xc] sm:$0xf] }
   0x3   :  { %2061 = vmatprep.subr.msk.mxu0 %vm73_vm0, %v1901_v2  ;;  %v1903_v5 = vld [vmem:[%s2989_s0 + $0x28] sm:$0xf]  ;;  %v1902_v6 = vld [vmem:[%s2989_s0 + $0x24] sm:$0xf]  ;;  %v1904_v7 = vld [vmem:[%s2989_s0 + $0x2c] sm:$0xf] }
   0x4   :  { %2062 = vmatpush3.msk.msra.mxu0 %vm73_vm0, %v1901_v2  ;;  %2069 = vmatprep.subr.msk.mxu1 %vm73_vm0, %v1902_v6  ;;  %v15_v8 = vld [vmem:[%s2989_s0 + $0x10] sm:$0xf]  ;;  %v16_v9 = vld [vmem:[%s2989_s0 + $0x14] sm:$0xf]  ;;  %v17_v10 = vld [vmem:[%s2989_s0 + $0x18] sm:$0xf] }
   0x5   :  { %2077 = vmatprep.subr.msk.mxu0 %vm73_vm0, %v1903_v5  ;;  %2070 = vmatpush3.msk.msra.mxu1 %vm73_vm0, %v1902_v6  ;;  %v18_v11 = vld [vmem:[%s2989_s0 + $0x1c] sm:$0xf]  ;;  %v1905_v16 = vld [vmem:[%s2989_s0 + $0x30] sm:$0xf]  ;;  %v1907_v23 = vld [vmem:[%s2989_s0 + $0x38] sm:$0xf] }
   0x6   :  { %2085 = vmatprep.subr.msk.mxu1 %vm73_vm0, %v1904_v7  ;;  %v1906_v26 = vld [vmem:[%s2989_s0 + $0x34] sm:$0xf]  ;;  %v1908_v33 = vld [vmem:[%s2989_s0 + $0x3c] sm:$0xf]  ;;  %v2436_v49 = vld [vmem:[%s2990_s1 + $0x28] sm:$0xff] }
   0x7   :  { %v2450_v0 = vld [vmem:[%s2990_s1 + $0x20] sm:$0xff] }
   0xf   :  { %162 = vxpose.xlu0.b32.start.end [1/1] (short) (narrow) %v12_v3, 32  ;;  %426 = vxpose.xlu1.b32.start.end [1/1] (short) (narrow) %v14_v4, 32 }
  0x1c   :  { %558 = vxpose.xlu0.b32.start.end [1/1] (short) (narrow) %v15_v8, 32  ;;  %690 = vxpose.xlu1.b32.start.end [1/1] (short) (narrow) %v16_v9, 32 }
  0x29   :  { %822 = vxpose.xlu0.b32.start.end [1/1] (short) (narrow) %v17_v10, 32  ;;  %954 = vxpose.xlu1.b32.start.end [1/1] (short) (narrow) %v18_v11, 32  ;;  %v2468_v10 = vld [vmem:[%s2990_s1 + $0x38] sm:$0xff] }
  0x82   :  { %v44_v12 = vpop.trf.xlu0  ;;  %v310_v13 = vpop.trf.xlu1 }
  0x83   :  { %2063 = vmatprep.mubr.msk.f32.mxu0 %vm60_vm1, %v44_v12 }
  0x86   :  { %v45_v14 = vpop.trf.xlu0  ;;  %v311_v15 = vpop.trf.xlu1 }
  0x87   :  { %2064 = vmatmul.mubr.msk.f32.vlgmr.msra.gmra.mrb[0].mxu0 %vm60_vm1, %v45_v14 }
  0x88   :  { %2078 = vmatpush3.msk.msra.mxu0 %vm73_vm0, %v1903_v5 }
  0x89   :  { %2093 = vmatprep.subr.msk.mxu0 %vm73_vm0, %v1905_v16 }
  0x8a   :  { %v46_v17 = vpop.trf.xlu0  ;;  %v312_v18 = vpop.trf.xlu1 }
  0x8b   :  { %2066 = vmatprep.mubr.msk.f32.mxu0 %vm60_vm1, %v46_v17 }
  0x8e   :  { %v47_v19 = vpop.trf.xlu0  ;;  %v313_v20 = vpop.trf.xlu1 }
  0x8f   :  { %2067 = vmatmul.mubr.msk.f32.gmra.mrb[2].mxu0 %vm60_vm1, %v47_v19 }
  0x90   :  { %2079 = vmatprep.mubr.msk.f32.mxu0 %vm60_vm1, %v310_v13 }
  0x92   :  { %v178_v21 = vpop.trf.xlu0  ;;  %v442_v22 = vpop.trf.xlu1 }
  0x93   :  { %2071 = vmatprep.mubr.msk.f32.mxu1 %vm60_vm1, %v178_v21  ;;  %2080 = vmatmul.mubr.msk.f32.vlgmr.msra.gmra.mrb[4].mxu0 %vm60_vm1, %v311_v15 }
  0x94   :  { %2082 = vmatprep.mubr.msk.f32.mxu0 %vm60_vm1, %v312_v18  ;;  %2094 = vmatpush3.msk.msra.mxu0 %vm73_vm0, %v1905_v16 }
  0x95   :  { %2109 = vmatprep.subr.msk.mxu0 %vm73_vm0, %v1907_v23 }
  0x96   :  { %v179_v24 = vpop.trf.xlu0  ;;  %v443_v25 = vpop.trf.xlu1 }
  0x97   :  { %2072 = vmatmul.mubr.msk.f32.vlgmr.msra.gmra.mrb[0].mxu1 %vm60_vm1, %v179_v24  ;;  %2083 = vmatmul.mubr.msk.f32.gmra.mrb[6].mxu0 %vm60_vm1, %v313_v20 }
  0x98   :  { %2086 = vmatpush3.msk.msra.mxu1 %vm73_vm0, %v1904_v7 }
  0x99   :  { %2101 = vmatprep.subr.msk.mxu1 %vm73_vm0, %v1906_v26 }
  0x9a   :  { %v180_v27 = vpop.trf.xlu0  ;;  %v444_v28 = vpop.trf.xlu1 }
  0x9b   :  { %2074 = vmatprep.mubr.msk.f32.mxu1 %vm60_vm1, %v180_v27 }
  0x9e   :  { %v181_v29 = vpop.trf.xlu0  ;;  %v445_v30 = vpop.trf.xlu1 }
  0x9f   :  { %2075 = vmatmul.mubr.msk.f32.gmra.mrb[2].mxu1 %vm60_vm1, %v181_v29 }
  0xa0   :  { %2087 = vmatprep.mubr.msk.f32.mxu1 %vm60_vm1, %v442_v22 }
  0xa2   :  { %v574_v31 = vpop.trf.xlu0  ;;  %v706_v32 = vpop.trf.xlu1 }
  0xa3   :  { %2088 = vmatmul.mubr.msk.f32.vlgmr.msra.gmra.mrb[4].mxu1 %vm60_vm1, %v443_v25  ;;  %2095 = vmatprep.mubr.msk.f32.mxu0 %vm60_vm1, %v574_v31 }
  0xa4   :  { %2102 = vmatpush3.msk.msra.mxu1 %vm73_vm0, %v1906_v26  ;;  %2090 = vmatprep.mubr.msk.f32.mxu1 %vm60_vm1, %v444_v28  ;;  %v2490_v26 = vld [vmem:[%s2990_s1 + $0x30] sm:$0xff] }
  0xa5   :  { %2117 = vmatprep.subr.msk.mxu1 %vm73_vm0, %v1908_v33 }
  0xa6   :  { %v575_v34 = vpop.trf.xlu0  ;;  %v707_v35 = vpop.trf.xlu1 }
  0xa7   :  { %2091 = vmatmul.mubr.msk.f32.gmra.mrb[6].mxu1 %vm60_vm1, %v445_v30  ;;  %2096 = vmatmul.mubr.msk.f32.vlgmr.msra.gmra.mrb[8].mxu0 %vm60_vm1, %v575_v34 }
  0xa8   :  { %2103 = vmatprep.mubr.msk.f32.mxu1 %vm60_vm1, %v706_v32  ;;  %2110 = vmatpush3.msk.msra.mxu0 %vm73_vm0, %v1907_v23 }
  0xaa   :  { %v576_v36 = vpop.trf.xlu0  ;;  %v708_v37 = vpop.trf.xlu1 }
  0xab   :  { %2104 = vmatmul.mubr.msk.f32.vlgmr.msra.gmra.mrb[8].mxu1 %vm60_vm1, %v707_v35  ;;  %2098 = vmatprep.mubr.msk.f32.mxu0 %vm60_vm1, %v576_v36 }
  0xac   :  { %2106 = vmatprep.mubr.msk.f32.mxu1 %vm60_vm1, %v708_v37  ;;  %2118 = vmatpush3.msk.msra.mxu1 %vm73_vm0, %v1908_v33 }
  0xae   :  { %v577_v38 = vpop.trf.xlu0  ;;  %v709_v39 = vpop.trf.xlu1 }
  0xaf   :  { %2099 = vmatmul.mubr.msk.f32.gmra.mrb[10].mxu0 %vm60_vm1, %v577_v38  ;;  %2107 = vmatmul.mubr.msk.f32.gmra.mrb[10].mxu1 %vm60_vm1, %v709_v39 }
  0xb2   :  { %v838_v40 = vpop.trf.xlu0  ;;  %v970_v41 = vpop.trf.xlu1 }
  0xb3   :  { %2111 = vmatprep.mubr.msk.f32.mxu0 %vm60_vm1, %v838_v40  ;;  %2119 = vmatprep.mubr.msk.f32.mxu1 %vm60_vm1, %v970_v41 }
  0xb6   :  { %v839_v42 = vpop.trf.xlu0  ;;  %v971_v43 = vpop.trf.xlu1 }
  0xb7   :  { %2112 = vmatmul.mubr.msk.f32.vlgmr.msra.gmra.mrb[12].mxu0 %vm60_vm1, %v839_v42  ;;  %2120 = vmatmul.mubr.msk.f32.vlgmr.msra.gmra.mrb[12].mxu1 %vm60_vm1, %v971_v43 }
  0xba   :  { %v840_v44 = vpop.trf.xlu0  ;;  %v972_v45 = vpop.trf.xlu1 }
  0xbb   :  { %2114 = vmatprep.mubr.msk.f32.mxu0 %vm60_vm1, %v840_v44  ;;  %2122 = vmatprep.mubr.msk.f32.mxu1 %vm60_vm1, %v972_v45 }
  0xbe   :  { %v841_v46 = vpop.trf.xlu0  ;;  %v973_v47 = vpop.trf.xlu1 }
  0xbf   :  { %2115 = vmatmul.mubr.msk.f32.gmra.mrb[14].mxu0 %vm60_vm1, %v841_v46  ;;  %2123 = vmatmul.mubr.msk.f32.gmra.mrb[14].mxu1 %vm60_vm1, %v973_v47 }
 0x15a   :  { %v2065_v48 = vpop.f32.mrb[0].mxu0 }
 0x15b   :  { %v1087_v50 = vmul.f32 0.5, %v2065_v48  ;;  %v143_v51 = vpop.f32.mrb[1].mxu0 }
 0x15c   :  { %v1086_v60 = vmul.f32 0.5, %v143_v51 }
 0x15d   :  { %v2439_v52 = vadd.f32 %v2436_v49, %v1087_v50 }
 0x15e   :  { %v2458_v4 = vadd.f32 %v2450_v0, %v1086_v60 }
 0x15f   :  { %v1159_v53 = vsel %vm1155_vm2, %v2439_v52, -inf }
 0x160   :  { %1160 = vmax.xlane.f32.xlu1 %v1159_v53  ;;  %v1156_v8 = vsel %vm1155_vm2, %v2458_v4, -inf }
 0x162   :  { %v2068_v54 = vpop.f32.mrb[2].mxu0 }
 0x163   :  { %v153_v55 = vpop.f32.mrb[3].mxu0  ;;  %v1089_v6 = vmul.f32 0.5, %v2068_v54 }
 0x164   :  { %v1088_v18 = vmul.f32 0.5, %v153_v55 }
 0x165   :  { %v2473_v16 = vadd.f32 %v2468_v10, %v1089_v6 }
 0x166   :  { %v2081_v56 = vpop.f32.mrb[4].mxu0  ;;  %v2496_v30 = vadd.f32 %v2490_v26, %v1088_v18 }
 0x167   :  { %v407_v57 = vpop.f32.mrb[5].mxu0  ;;  %v1165_v24 = vsel %vm1155_vm2, %v2473_v16, -inf  ;;  %v1095_v37 = vmul.f32 0.5, %v2081_v56 }
 0x168   :  { %v1162_v38 = vsel %vm1155_vm2, %v2496_v30, -inf  ;;  %v1094_v48 = vmul.f32 0.5, %v407_v57 }
 0x169   :  { %v2516_v50 = vadd.f32 %v2436_v49, %v1095_v37 }
 0x16a   :  { %v2073_v58 = vpop.f32.mrb[0].mxu1  ;;  %v2443_v59 = vpop.f32.mrb[6].mxu0 }
 0x16b   :  { %v1091_v61 = vmul.f32 0.5, %v2073_v58  ;;  %v275_v62 = vpop.f32.mrb[1].mxu1  ;;  %v2445_v63 = vpop.f32.mrb[7].mxu0  ;;  %v1183_v57 = vsel %vm1155_vm2, %v2516_v50, -inf  ;;  %v2531_v58 = vadd.f32 %v2450_v0, %v1094_v48 }
 0x16c   :  { %v1090_v2 = vmul.f32 0.5, %v275_v62 }
 0x16d   :  { %v2453_v1 = vadd.f32 %v2436_v49, %v1091_v61  ;;  %v1180_v18 = vsel %vm1155_vm2, %v2531_v58, -inf }
 0x16e   :  { %v2463_v9 = vadd.f32 %v2450_v0, %v1090_v2 }
 0x16f   :  { %v1171_v3 = vsel %vm1155_vm2, %v2453_v1, -inf }
 0x170   :  { %1172 = vmax.xlane.f32.xlu0 %v1171_v3  ;;  %v1168_v15 = vsel %vm1155_vm2, %v2463_v9, -inf }
 0x172   :  { %v2076_v5 = vpop.f32.mrb[2].mxu1 }
 0x173   :  { %v285_v7 = vpop.f32.mrb[3].mxu1  ;;  %v1093_v12 = vmul.f32 0.5, %v2076_v5 }
 0x174   :  { %1157 = vmax.xlane.f32.xlu0 %v1156_v8  ;;  %v1092_v28 = vmul.f32 0.5, %v285_v7 }
 0x175   :  { %v2485_v25 = vadd.f32 %v2468_v10, %v1093_v12 }
 0x176   :  { %v2089_v11 = vpop.f32.mrb[4].mxu1  ;;  %v2510_v43 = vadd.f32 %v2490_v26, %v1092_v28 }
 0x177   :  { %v1099_v13 = vmul.f32 0.5, %v2089_v11  ;;  %v539_v14 = vpop.f32.mrb[5].mxu1  ;;  %v1177_v34 = vsel %vm1155_vm2, %v2485_v25, -inf }
 0x178   :  { %1169 = vmax.xlane.f32.xlu0 %v1168_v15  ;;  %v1174_v51 = vsel %vm1155_vm2, %v2510_v43, -inf  ;;  %v1098_v62 = vmul.f32 0.5, %v539_v14  ;;  %v1097_v14 = vmul.f32 0.5, %v2443_v59 }
 0x179   :  { %v2476_v17 = vadd.f32 %v2436_v49, %v1099_v13 }
 0x17a   :  { %v2478_v19 = vpop.f32.mrb[6].mxu1  ;;  %v2097_v20 = vpop.f32.mrb[8].mxu0 }
 0x17b   :  { %v1103_v21 = vmul.f32 0.5, %v2097_v20  ;;  %v2480_v22 = vpop.f32.mrb[7].mxu1  ;;  %v671_v23 = vpop.f32.mrb[9].mxu0  ;;  %v2550_v20 = vadd.f32 %v2450_v0, %v1098_v62  ;;  %v1101_v48 = vmul.f32 0.5, %v2478_v19 }
 0x17c   :  { %1166 = vmax.xlane.f32.xlu0 %v1165_v24  ;;  %v1102_v31 = vmul.f32 0.5, %v671_v23  ;;  %v1096_v23 = vmul.f32 0.5, %v2445_v63  ;;  %v2556_v24 = vadd.f32 %v2468_v10, %v1097_v14 }
 0x17d   :  { %v2493_v27 = vadd.f32 %v2436_v49, %v1103_v21 }
 0x17e   :  { %v2105_v29 = vpop.f32.mrb[8].mxu1  ;;  %v2513_v44 = vadd.f32 %v2450_v0, %v1102_v31  ;;  %v1189_v63 = vsel %vm1155_vm2, %v2556_v24, -inf }
 0x17f   :  { %v1107_v32 = vmul.f32 0.5, %v2105_v29  ;;  %v803_v33 = vpop.f32.mrb[9].mxu1  ;;  %v1207_v35 = vsel %vm1155_vm2, %v2493_v27, -inf  ;;  %v1192_v29 = vsel %vm1155_vm2, %v2550_v20, -inf }
 0x180   :  { %1178 = vmax.xlane.f32.xlu0 %v1177_v34  ;;  %1208 = vmax.xlane.f32.xlu1 %v1207_v35  ;;  %v1106_v41 = vmul.f32 0.5, %v803_v33  ;;  %v1204_v53 = vsel %vm1155_vm2, %v2513_v44, -inf }
 0x181   :  { %v2503_v36 = vadd.f32 %v2436_v49, %v1107_v32 }
 0x182   :  { %v2100_v39 = vpop.f32.mrb[10].mxu0  ;;  %v2108_v40 = vpop.f32.mrb[10].mxu1  ;;  %v2523_v54 = vadd.f32 %v2450_v0, %v1106_v41 }
 0x183   :  { %v1219_v42 = vsel %vm1155_vm2, %v2503_v36, -inf  ;;  %v681_v45 = vpop.f32.mrb[11].mxu0  ;;  %v813_v46 = vpop.f32.mrb[11].mxu1  ;;  %v1105_v47 = vmul.f32 0.5, %v2100_v39  ;;  %v1109_v55 = vmul.f32 0.5, %v2108_v40  ;;  %v1100_v40 = vmul.f32 0.5, %v2480_v22 }
 0x184   :  { %1163 = vmax.xlane.f32.xlu0 %v1162_v38  ;;  %1220 = vmax.xlane.f32.xlu1 %v1219_v42  ;;  %v1216_v2 = vsel %vm1155_vm2, %v2523_v54, -inf  ;;  %v1104_v15 = vmul.f32 0.5, %v681_v45  ;;  %v1108_v59 = vmul.f32 0.5, %v813_v46  ;;  %v2571_v38 = vadd.f32 %v2490_v26, %v1096_v23 }
 0x185   :  { %v2526_v56 = vadd.f32 %v2468_v10, %v1105_v47  ;;  %v2538_v11 = vadd.f32 %v2468_v10, %v1109_v55  ;;  %v2587_v22 = vadd.f32 %v2490_v26, %v1100_v40 }
 0x186   :  { %v2561_v31 = vadd.f32 %v2490_v26, %v1104_v15  ;;  %v2574_v39 = vadd.f32 %v2490_v26, %v1108_v59  ;;  %v1186_v42 = vsel %vm1155_vm2, %v2571_v38, -inf }
 0x187   :  { %v1213_v8 = vsel %vm1155_vm2, %v2526_v56, -inf  ;;  %v1225_v21 = vsel %vm1155_vm2, %v2538_v11, -inf }
 0x188   :  { %1175 = vmax.xlane.f32.xlu0 %v1174_v51  ;;  %1205 = vmax.xlane.f32.xlu1 %v1204_v53  ;;  %v1210_v37 = vsel %vm1155_vm2, %v2561_v31, -inf  ;;  %v1222_v45 = vsel %vm1155_vm2, %v2574_v39, -inf  ;;  %v1195_v51 = vsel %vm1155_vm2, %v2476_v17, -inf }
 0x18a   :  { %v2113_v60 = vpop.f32.mrb[12].mxu0  ;;  %v2121_v61 = vpop.f32.mrb[12].mxu1 }
 0x18b   :  { %v1111_v3 = vmul.f32 0.5, %v2113_v60  ;;  %v935_v5 = vpop.f32.mrb[13].mxu0  ;;  %v1115_v6 = vmul.f32 0.5, %v2121_v61  ;;  %v1067_v7 = vpop.f32.mrb[13].mxu1  ;;  %v1198_v60 = vsel %vm1155_vm2, %v2587_v22, -inf  ;;  %v2600_v61 = vadd.f32 %v2468_v10, %v1101_v48 }
 0x18c   :  { %1184 = vmax.xlane.f32.xlu0 %v1183_v57  ;;  %1217 = vmax.xlane.f32.xlu1 %v1216_v2  ;;  %v1110_v41 = vmul.f32 0.5, %v935_v5  ;;  %v1114_v47 = vmul.f32 0.5, %v1067_v7 }
 0x18d   :  { %v2541_v12 = vadd.f32 %v2436_v49, %v1111_v3  ;;  %v2544_v13 = vadd.f32 %v2436_v49, %v1115_v6 }
 0x18e   :  { %v2590_v53 = vadd.f32 %v2450_v0, %v1110_v41  ;;  %v2593_v57 = vadd.f32 %v2450_v0, %v1114_v47  ;;  %v1201_v0 = vsel %vm1155_vm2, %v2600_v61, -inf }
 0x18f   :  { %v1231_v46 = vsel %vm1155_vm2, %v2541_v12, -inf  ;;  %v1243_v14 = vsel %vm1155_vm2, %v2544_v13, -inf }
 0x190   :  { %1181 = vmax.xlane.f32.xlu0 %v1180_v18  ;;  %1214 = vmax.xlane.f32.xlu1 %v1213_v8  ;;  %v1228_v19 = vsel %vm1155_vm2, %v2590_v53, -inf  ;;  %v1240_v62 = vsel %vm1155_vm2, %v2593_v57, -inf }
 0x192   :  { %v2116_v49 = vpop.f32.mrb[14].mxu0  ;;  %v2124_v28 = vpop.f32.mrb[14].mxu1 }
 0x193   :  { %v945_v32 = vpop.f32.mrb[15].mxu0  ;;  %v1117_v33 = vmul.f32 0.5, %v2124_v28  ;;  %v1077_v34 = vpop.f32.mrb[15].mxu1  ;;  %v1113_v55 = vmul.f32 0.5, %v2116_v49 }
 0x194   :  { %1193 = vmax.xlane.f32.xlu0 %v1192_v29  ;;  %1226 = vmax.xlane.f32.xlu1 %v1225_v21  ;;  %v1112_v3 = vmul.f32 0.5, %v945_v32  ;;  %v1116_v7 = vmul.f32 0.5, %v1077_v34 }
 0x195   :  { %v2564_v35 = vadd.f32 %v2468_v10, %v1117_v33  ;;  %v2605_v2 = vadd.f32 %v2468_v10, %v1113_v55 }
 0x196   :  { %v2612_v6 = vadd.f32 %v2490_v26, %v1112_v3  ;;  %v2617_v10 = vadd.f32 %v2490_v26, %v1116_v7 }
 0x197   :  { %v1237_v5 = vsel %vm1155_vm2, %v2605_v2, -inf  ;;  %v1249_v18 = vsel %vm1155_vm2, %v2564_v35, -inf }
 0x198   :  { %1190 = vmax.xlane.f32.xlu0 %v1189_v63  ;;  %1211 = vmax.xlane.f32.xlu1 %v1210_v37  ;;  %v1234_v8 = vsel %vm1155_vm2, %v2612_v6, -inf  ;;  %v1246_v15 = vsel %vm1155_vm2, %v2617_v10, -inf }
 0x19c   :  { %1187 = vmax.xlane.f32.xlu0 %v1186_v42  ;;  %1223 = vmax.xlane.f32.xlu1 %v1222_v45 }
 0x1a0   :  { %1196 = vmax.xlane.f32.xlu0 %v1195_v51  ;;  %1232 = vmax.xlane.f32.xlu1 %v1231_v46 }
 0x1a4   :  { %1199 = vmax.xlane.f32.xlu0 %v1198_v60  ;;  %1229 = vmax.xlane.f32.xlu1 %v1228_v19 }
 0x1a8   :  { %1202 = vmax.xlane.f32.xlu0 %v1201_v0  ;;  %1241 = vmax.xlane.f32.xlu1 %v1240_v62 }
 0x1ac   :  { %1238 = vmax.xlane.f32.xlu1 %v1237_v5 }
 0x1b0   :  { %1235 = vmax.xlane.f32.xlu1 %v1234_v8 }
 0x1b4   :  { %1244 = vmax.xlane.f32.xlu1 %v1243_v14 }
 0x1b8   :  { %1247 = vmax.xlane.f32.xlu1 %v1246_v15 }
 0x1bc   :  { %1250 = vmax.xlane.f32.xlu1 %v1249_v18 }
 0x1ed   :  { %v1161_v21 = vpop.xlane.xlu1 %1160 }
 0x1ee   :  { %v1253_v23 = vsub.f32 %v2439_v52, %v1161_v21 }
 0x1f0   :  { %v1286_v49 = vmul.f32 1.442695, %v1253_v23 }
 0x1f2   :  { %2194 = vpow2.f32 %v1286_v49 }
 0x1fc   :  { %v2626_v28 = vpop.eup %2194 }
 0x1fd   :  { %v1173_v26 = vpop.xlane.xlu0 %1172  ;;  %v1351_v59 = vsel %vm1155_vm2, %v2626_v28, 0.0 }
 0x1fe   :  { %v1257_v29 = vsub.f32 %v2453_v1, %v1173_v26  ;;  %1352 = vadd.xlane.f32.xlu0 %v1351_v59 }
 0x200   :  { %v1294_v32 = vmul.f32 1.442695, %v1257_v29 }
 0x201   :  { %v1158_v33 = vpop.xlane.xlu0 %1157 }
 0x202   :  { %2196 = vpow2.f32 %v1294_v32  ;;  %v1252_v34 = vsub.f32 %v2458_v4, %v1158_v33 }
 0x204   :  { %v1284_v63 = vmul.f32 1.442695, %v1252_v34 }
 0x205   :  { %v1170_v37 = vpop.xlane.xlu0 %1169 }
 0x206   :  { %2198 = vpow2.f32 %v1284_v63  ;;  %v1256_v52 = vsub.f32 %v2463_v9, %v1170_v37 }
 0x208   :  { %v1292_v40 = vmul.f32 1.442695, %v1256_v52 }
 0x209   :  { %v1167_v41 = vpop.xlane.xlu0 %1166 }
 0x20a   :  { %2200 = vpow2.f32 %v1292_v40  ;;  %v1255_v42 = vsub.f32 %v2473_v16, %v1167_v41 }
 0x20c   :  { %v2634_v45 = vpop.eup %2196  ;;  %v1290_v46 = vmul.f32 1.442695, %v1255_v42 }
 0x20d   :  { %v1209_v1 = vpop.xlane.xlu1 %1208  ;;  %v1179_v47 = vpop.xlane.xlu0 %1178  ;;  %v1363_v48 = vsel %vm1155_vm2, %v2634_v45, 0.0 }
 0x20e   :  { %2202 = vpow2.f32 %v1290_v46  ;;  %v1269_v4 = vsub.f32 %v2493_v27, %v1209_v1  ;;  %v1259_v51 = vsub.f32 %v2485_v25, %v1179_v47  ;;  %1364 = vadd.xlane.f32.xlu0 %v1363_v48 }
 0x210   :  { %v2640_v9 = vpop.eup %2198  ;;  %v1318_v55 = vmul.f32 1.442695, %v1269_v4  ;;  %v1298_v60 = vmul.f32 1.442695, %v1259_v51 }
 0x211   :  { %v1221_v19 = vpop.xlane.xlu1 %1220  ;;  %v1164_v16 = vpop.xlane.xlu0 %1163  ;;  %v1348_v62 = vsel %vm1155_vm2, %v2640_v9, 0.0 }
 0x212   :  { %2204 = vpow2.f32 %v1318_v55  ;;  %v1273_v3 = vsub.f32 %v2503_v36, %v1221_v19  ;;  %v1254_v0 = vsub.f32 %v2496_v30, %v1164_v16  ;;  %1349 = vadd.xlane.f32.xlu0 %v1348_v62  ;;  %v1540_v19 = vld [vmem:[%s2990_s1] sm:$0xff] }
 0x213   :  { %2206 = vpow2.f32 %v1298_v60 }
 0x214   :  { %v2646_v27 = vpop.eup %2200  ;;  %v1326_v25 = vmul.f32 1.442695, %v1273_v3  ;;  %v1288_v5 = vmul.f32 1.442695, %v1254_v0 }
 0x215   :  { %v1206_v7 = vpop.xlane.xlu1 %1205  ;;  %v1176_v8 = vpop.xlane.xlu0 %1175  ;;  %v1360_v14 = vsel %vm1155_vm2, %v2646_v27, 0.0 }
 0x216   :  { %2208 = vpow2.f32 %v1326_v25  ;;  %v1268_v15 = vsub.f32 %v2513_v44, %v1206_v7  ;;  %v1258_v18 = vsub.f32 %v2510_v43, %v1176_v8  ;;  %1361 = vadd.xlane.f32.xlu0 %v1360_v14 }
 0x217   :  { %2210 = vpow2.f32 %v1288_v5 }
 0x218   :  { %v2652_v36 = vpop.eup %2202  ;;  %v1316_v30 = vmul.f32 1.442695, %v1268_v15  ;;  %v1296_v21 = vmul.f32 1.442695, %v1258_v18  ;;  %v1542_v18 = vld [vmem:[%s2990_s1 + $0x10] sm:$0xff] }
 0x219   :  { %v1218_v23 = vpop.xlane.xlu1 %1217  ;;  %v1185_v49 = vpop.xlane.xlu0 %1184  ;;  %v1357_v26 = vsel %vm1155_vm2, %v2652_v36, 0.0 }
 0x21a   :  { %2212 = vpow2.f32 %v1316_v30  ;;  %v1272_v59 = vsub.f32 %v2523_v54, %v1218_v23  ;;  %v1261_v29 = vsub.f32 %v2516_v50, %v1185_v49  ;;  %1358 = vadd.xlane.f32.xlu0 %v1357_v26 }
 0x21b   :  { %2214 = vpow2.f32 %v1296_v21 }
 0x21c   :  { %v2658_v44 = vpop.eup %2204  ;;  %v1324_v43 = vmul.f32 1.442695, %v1272_v59  ;;  %v1302_v32 = vmul.f32 1.442695, %v1261_v29 }
 0x21d   :  { %v2660_v33 = vpop.eup %2206  ;;  %v1215_v34 = vpop.xlane.xlu1 %1214  ;;  %v1399_v37 = vsel %vm1155_vm2, %v2658_v44, 0.0 }
 0x21e   :  { %v1182_v63 = vpop.xlane.xlu0 %1181  ;;  %2216 = vpow2.f32 %v1324_v43  ;;  %v1271_v52 = vsub.f32 %v2526_v56, %v1215_v34  ;;  %1400 = vadd.xlane.f32.xlu1 %v1399_v37  ;;  %v1369_v50 = vsel %vm1155_vm2, %v2660_v33, 0.0 }
 0x21f   :  { %v1260_v54 = vsub.f32 %v2531_v58, %v1182_v63  ;;  %2218 = vpow2.f32 %v1302_v32  ;;  %1370 = vadd.xlane.f32.xlu0 %v1369_v50 }
 0x220   :  { %v2668_v40 = vpop.eup %2208  ;;  %v1322_v41 = vmul.f32 1.442695, %v1271_v52 }
 0x221   :  { %v1300_v42 = vmul.f32 1.442695, %v1260_v54  ;;  %v2670_v46 = vpop.eup %2210  ;;  %v1227_v1 = vpop.xlane.xlu1 %1226  ;;  %v1411_v48 = vsel %vm1155_vm2, %v2668_v40, 0.0 }
 0x222   :  { %v1194_v47 = vpop.xlane.xlu0 %1193  ;;  %2220 = vpow2.f32 %v1322_v41  ;;  %v1275_v56 = vsub.f32 %v2538_v11, %v1227_v1  ;;  %1412 = vadd.xlane.f32.xlu1 %v1411_v48  ;;  %v1354_v4 = vsel %vm1155_vm2, %v2670_v46, 0.0  ;;  %v1541_v11 = vld [vmem:[%s2990_s1 + $0x8] sm:$0xff] }
 0x223   :  { %v1264_v58 = vsub.f32 %v2550_v20, %v1194_v47  ;;  %2222 = vpow2.f32 %v1300_v42  ;;  %1355 = vadd.xlane.f32.xlu0 %v1354_v4  ;;  %v2181_v0 = vpack.c.bf16 %v1541_v11, %v1540_v19 }
 0x224   :  { %v2678_v51 = vpop.eup %2212  ;;  %v1330_v55 = vmul.f32 1.442695, %v1275_v56 }
 0x225   :  { %v1308_v60 = vmul.f32 1.442695, %v1264_v58  ;;  %v2686_v16 = vpop.eup %2214  ;;  %v1212_v20 = vpop.xlane.xlu1 %1211  ;;  %v1396_v3 = vsel %vm1155_vm2, %v2678_v51, 0.0  ;;  %2182 = vmatprep.subr.bf16.mxu0 %v2181_v0  ;;  %2189 = vmatprep.subr.bf16.mxu1 %v2181_v0 }
 0x226   :  { %v1191_v62 = vpop.xlane.xlu0 %1190  ;;  %2224 = vpow2.f32 %v1330_v55  ;;  %v1270_v25 = vsub.f32 %v2561_v31, %v1212_v20  ;;  %1397 = vadd.xlane.f32.xlu1 %v1396_v3  ;;  %v1366_v7 = vsel %vm1155_vm2, %v2686_v16, 0.0  ;;  %2184 = vmatpush3.bf16.msra.mxu0 %v2181_v0 }
 0x227   :  { %v1263_v5 = vsub.f32 %v2556_v24, %v1191_v62  ;;  %2226 = vpow2.f32 %v1308_v60  ;;  %1367 = vadd.xlane.f32.xlu0 %v1366_v7  ;;  %v1543_v24 = vld [vmem:[%s2990_s1 + $0x18] sm:$0xff]  ;;  %2191 = vmatpush3.bf16.msra.mxu1 %v2181_v0 }
 0x228   :  { %v2694_v8 = vpop.eup %2216  ;;  %v1320_v14 = vmul.f32 1.442695, %v1270_v25  ;;  %v2185_v49 = vpack.c.bf16 %v1543_v24, %v1542_v18 }
 0x229   :  { %v1306_v15 = vmul.f32 1.442695, %v1263_v5  ;;  %v2702_v31 = vpop.eup %2218  ;;  %v1224_v30 = vpop.xlane.xlu1 %1223  ;;  %v1408_v23 = vsel %vm1155_vm2, %v2694_v8, 0.0 }
 0x22a   :  { %v1188_v21 = vpop.xlane.xlu0 %1187  ;;  %2228 = vpow2.f32 %v1320_v14  ;;  %v1274_v26 = vsub.f32 %v2574_v39, %v1224_v30  ;;  %1409 = vadd.xlane.f32.xlu1 %v1408_v23  ;;  %v1375_v29 = vsel %vm1155_vm2, %v2702_v31, 0.0  ;;  %2186 = vmatprep.subr.bf16.mxu0 %v2185_v49 }
 0x22b   :  { %v1262_v59 = vsub.f32 %v2571_v38, %v1188_v21  ;;  %2230 = vpow2.f32 %v1306_v15  ;;  %1376 = vadd.xlane.f32.xlu0 %v1375_v29  ;;  %2188 = vmatpush3.bf16.msra.mxu0 %v2185_v49 }
 0x22c   :  { %v2710_v43 = vpop.eup %2220  ;;  %v1328_v32 = vmul.f32 1.442695, %v1274_v26  ;;  %2190 = vmatprep.subr.bf16.mxu1 %v2185_v49 }
 0x22d   :  { %v1304_v34 = vmul.f32 1.442695, %v1262_v59  ;;  %v2712_v63 = vpop.eup %2222  ;;  %v1233_v37 = vpop.xlane.xlu1 %1232  ;;  %v1405_v38 = vsel %vm1155_vm2, %v2710_v43, 0.0  ;;  %2192 = vmatpush3.bf16.msra.mxu1 %v2185_v49 }
 0x22e   :  { %v1197_v52 = vpop.xlane.xlu0 %1196  ;;  %2232 = vpow2.f32 %v1328_v32  ;;  %v1277_v39 = vsub.f32 %v2541_v12, %v1233_v37  ;;  %1406 = vadd.xlane.f32.xlu1 %v1405_v38  ;;  %v1372_v50 = vsel %vm1155_vm2, %v2712_v63, 0.0 }
 0x22f   :  { %v1265_v54 = vsub.f32 %v2476_v17, %v1197_v52  ;;  %2234 = vpow2.f32 %v1304_v34  ;;  %1373 = vadd.xlane.f32.xlu0 %v1372_v50 }
 0x230   :  { %v2720_v41 = vpop.eup %2224  ;;  %v1334_v42 = vmul.f32 1.442695, %v1277_v39 }
 0x231   :  { %v1310_v1 = vmul.f32 1.442695, %v1265_v54  ;;  %v2722_v47 = vpop.eup %2226  ;;  %v1230_v48 = vpop.xlane.xlu1 %1229  ;;  %v1417_v58 = vsel %vm1155_vm2, %v2720_v41, 0.0 }
 0x232   :  { %v1200_v56 = vpop.xlane.xlu0 %1199  ;;  %2236 = vpow2.f32 %v1334_v42  ;;  %v1276_v17 = vsub.f32 %v2590_v53, %v1230_v48  ;;  %1418 = vadd.xlane.f32.xlu1 %v1417_v58  ;;  %v1384_v4 = vsel %vm1155_vm2, %v2722_v47, 0.0 }
 0x233   :  { %v1266_v12 = vsub.f32 %v2587_v22, %v1200_v56  ;;  %2238 = vpow2.f32 %v1310_v1  ;;  %1385 = vadd.xlane.f32.xlu0 %v1384_v4 }
 0x234   :  { %v2730_v55 = vpop.eup %2228  ;;  %v1332_v60 = vmul.f32 1.442695, %v1276_v17 }
 0x235   :  { %v1312_v19 = vmul.f32 1.442695, %v1266_v12  ;;  %v2732_v11 = vpop.eup %2230  ;;  %v1242_v20 = vpop.xlane.xlu1 %1241  ;;  %v1402_v3 = vsel %vm1155_vm2, %v2730_v55, 0.0 }
 0x236   :  { %v1203_v62 = vpop.xlane.xlu0 %1202  ;;  %2240 = vpow2.f32 %v1332_v60  ;;  %v1280_v22 = vsub.f32 %v2593_v57, %v1242_v20  ;;  %1403 = vadd.xlane.f32.xlu1 %v1402_v3  ;;  %v1381_v0 = vsel %vm1155_vm2, %v2732_v11, 0.0 }
 0x237   :  { %v1267_v53 = vsub.f32 %v2600_v61, %v1203_v62  ;;  %2242 = vpow2.f32 %v1312_v19  ;;  %1382 = vadd.xlane.f32.xlu0 %v1381_v0 }
 0x238   :  { %v2740_v25 = vpop.eup %2232  ;;  %v1340_v5 = vmul.f32 1.442695, %v1280_v22 }
 0x239   :  { %v1314_v7 = vmul.f32 1.442695, %v1267_v53  ;;  %v2742_v14 = vpop.eup %2234  ;;  %v1239_v15 = vpop.xlane.xlu1 %1238  ;;  %v1414_v18 = vsel %vm1155_vm2, %v2740_v25, 0.0 }
 0x23a   :  { %2244 = vpow2.f32 %v1340_v5  ;;  %v1279_v57 = vsub.f32 %v2605_v2, %v1239_v15  ;;  %1415 = vadd.xlane.f32.xlu1 %v1414_v18  ;;  %v1378_v61 = vsel %vm1155_vm2, %v2742_v14, 0.0 }
 0x23b   :  { %2246 = vpow2.f32 %v1314_v7  ;;  %1379 = vadd.xlane.f32.xlu0 %v1378_v61 }
 0x23c   :  { %v2749_v24 = vpop.eup %2236  ;;  %v1338_v30 = vmul.f32 1.442695, %v1279_v57 }
 0x23d   :  { %v2751_v21 = vpop.eup %2238  ;;  %v1236_v23 = vpop.xlane.xlu1 %1235  ;;  %v1423_v49 = vsel %vm1155_vm2, %v2749_v24, 0.0 }
 0x23e   :  { %2248 = vpow2.f32 %v1338_v30  ;;  %v1278_v26 = vsub.f32 %v2612_v6, %v1236_v23  ;;  %1424 = vadd.xlane.f32.xlu1 %v1423_v49  ;;  %v1387_v2 = vsel %vm1155_vm2, %v2751_v21, 0.0 }
 0x23f   :  { %1388 = vadd.xlane.f32.xlu0 %v1387_v2 }
 0x240   :  { %v2758_v59 = vpop.eup %2240  ;;  %v1336_v29 = vmul.f32 1.442695, %v1278_v26 }
 0x241   :  { %v2760_v32 = vpop.eup %2242  ;;  %v1245_v34 = vpop.xlane.xlu1 %1244  ;;  %v1420_v37 = vsel %vm1155_vm2, %v2758_v59, 0.0 }
 0x242   :  { %2250 = vpow2.f32 %v1336_v29  ;;  %v1281_v52 = vsub.f32 %v2544_v13, %v1245_v34  ;;  %1421 = vadd.xlane.f32.xlu1 %v1420_v37  ;;  %v1390_v6 = vsel %vm1155_vm2, %v2760_v32, 0.0 }
 0x243   :  { %1391 = vadd.xlane.f32.xlu0 %v1390_v6 }
 0x244   :  { %v2767_v38 = vpop.eup %2244  ;;  %v1342_v39 = vmul.f32 1.442695, %v1281_v52 }
 0x245   :  { %v2769_v54 = vpop.eup %2246  ;;  %v1248_v50 = vpop.xlane.xlu1 %1247  ;;  %v1432_v42 = vsel %vm1155_vm2, %v2767_v38, 0.0 }
 0x246   :  { %2252 = vpow2.f32 %v1342_v39  ;;  %v1282_v1 = vsub.f32 %v2617_v10, %v1248_v50  ;;  %1433 = vadd.xlane.f32.xlu1 %v1432_v42  ;;  %v1393_v13 = vsel %vm1155_vm2, %v2769_v54, 0.0 }
 0x247   :  { %1394 = vadd.xlane.f32.xlu0 %v1393_v13 }
 0x248   :  { %v2776_v48 = vpop.eup %2248  ;;  %v1344_v56 = vmul.f32 1.442695, %v1282_v1 }
 0x249   :  { %v1251_v58 = vpop.xlane.xlu1 %1250  ;;  %v1429_v17 = vsel %vm1155_vm2, %v2776_v48, 0.0 }
 0x24a   :  { %2254 = vpow2.f32 %v1344_v56  ;;  %v1283_v12 = vsub.f32 %v2564_v35, %v1251_v58  ;;  %1430 = vadd.xlane.f32.xlu1 %v1429_v17 }
 0x24c   :  { %v2781_v4 = vpop.eup %2250  ;;  %v1346_v60 = vmul.f32 1.442695, %v1283_v12 }
 0x24d   :  { %v1426_v10 = vsel %vm1155_vm2, %v2781_v4, 0.0 }
 0x24e   :  { %2256 = vpow2.f32 %v1346_v60  ;;  %1427 = vadd.xlane.f32.xlu1 %v1426_v10 }
 0x250   :  { %v2785_v19 = vpop.eup %2252 }
 0x251   :  { %v1435_v20 = vsel %vm1155_vm2, %v2785_v19, 0.0 }
 0x252   :  { %1436 = vadd.xlane.f32.xlu1 %v1435_v20 }
 0x254   :  { %v2789_v62 = vpop.eup %2254 }
 0x255   :  { %v1438_v35 = vsel %vm1155_vm2, %v2789_v62, 0.0 }
 0x256   :  { %1439 = vadd.xlane.f32.xlu1 %v1438_v35 }
 0x258   :  { %v2793_v3 = vpop.eup %2256 }
 0x259   :  { %v1441_v22 = vsel %vm1155_vm2, %v2793_v3, 0.0 }
 0x25a   :  { %1442 = vadd.xlane.f32.xlu1 %v1441_v22 }
 0x28b   :  { %v1353_v53 = vpop.xlane.xlu0 %1352 }
 0x28c   :  { %2258 = vrcp.f32 %v1353_v53 }
 0x296   :  { %v2259_v18 = vpop.eup %2258 }
 0x297   :  { %v1509_v23 = vmul.f32 %v2259_v18, %v2626_v28 }
 0x29b   :  { %v1365_v0 = vpop.xlane.xlu0 %1364 }
 0x29f   :  { %v1350_v5 = vpop.xlane.xlu0 %1349 }
 0x2a0   :  { %2260 = vrcp.f32 %v1350_v5 }
 0x2a3   :  { %v1362_v7 = vpop.xlane.xlu0 %1361 }
 0x2a4   :  { %2262 = vrcp.f32 %v1362_v7 }
 0x2a7   :  { %v1359_v15 = vpop.xlane.xlu0 %1358 }
 0x2a8   :  { %2264 = vrcp.f32 %v1359_v15 }
 0x2aa   :  { %v2261_v57 = vpop.eup %2260 }
 0x2ab   :  { %v1401_v61 = vpop.xlane.xlu1 %1400  ;;  %v1508_v30 = vmul.f32 %v2261_v57, %v2640_v9 }
 0x2ac   :  { %v1371_v49 = vpop.xlane.xlu0 %1370 }
 0x2ad   :  { %2133 = vmatprep.mubr.msk.f32.mxu0 %vm1155_vm2, %v1508_v30 }
 0x2ae   :  { %2134 = vmatmul.mubr.msk.f32.vlgmr.msra.gmra.mrb[16].mxu0 %vm1155_vm2, %v1509_v23  ;;  %v2263_v28 = vpop.eup %2262 }
 0x2af   :  { %v1413_v26 = vpop.xlane.xlu1 %1412  ;;  %v1512_v17 = vmul.f32 %v2263_v28, %v2646_v27 }
 0x2b0   :  { %v1356_v2 = vpop.xlane.xlu0 %1355 }
 0x2b1   :  { %2266 = vrcp.f32 %v1356_v2 }
 0x2b2   :  { %2268 = vrcp.f32 %v1365_v0  ;;  %v2265_v52 = vpop.eup %2264 }
 0x2b3   :  { %2270 = vrcp.f32 %v1401_v61  ;;  %v1398_v29 = vpop.xlane.xlu1 %1397  ;;  %v1511_v56 = vmul.f32 %v2265_v52, %v2652_v36 }
 0x2b4   :  { %2272 = vrcp.f32 %v1398_v29  ;;  %v1368_v34 = vpop.xlane.xlu0 %1367 }
 0x2b5   :  { %2274 = vrcp.f32 %v1368_v34 }
 0x2b6   :  { %2276 = vrcp.f32 %v1371_v49 }
 0x2b7   :  { %v1410_v37 = vpop.xlane.xlu1 %1409 }
 0x2b8   :  { %v1377_v9 = vpop.xlane.xlu0 %1376 }
 0x2b9   :  { %2278 = vrcp.f32 %v1377_v9 }
 0x2bb   :  { %v2267_v6 = vpop.eup %2266  ;;  %v1407_v39 = vpop.xlane.xlu1 %1406 }
 0x2bc   :  { %v2269_v50 = vpop.eup %2268  ;;  %v1374_v42 = vpop.xlane.xlu0 %1373  ;;  %v1510_v1 = vmul.f32 %v2267_v6, %v2670_v46 }
 0x2bd   :  { %v2271_v13 = vpop.eup %2270  ;;  %2280 = vrcp.f32 %v1374_v42  ;;  %v1513_v36 = vmul.f32 %v2269_v50, %v2634_v45 }
 0x2be   :  { %v2273_v58 = vpop.eup %2272  ;;  %2136 = vmatprep.mubr.msk.f32.mxu0 %vm1155_vm2, %v1510_v1  ;;  %v1525_v20 = vmul.f32 %v2271_v13, %v2658_v44  ;;  %2282 = vrcp.f32 %v1410_v37 }
 0x2bf   :  { %v2275_v12 = vpop.eup %2274  ;;  %2137 = vmatmul.mubr.msk.f32.gmra.mrb[18].mxu0 %vm1155_vm2, %v1511_v56  ;;  %v1419_v60 = vpop.xlane.xlu1 %1418  ;;  %v1524_v10 = vmul.f32 %v2273_v58, %v2678_v51  ;;  %2284 = vrcp.f32 %v1407_v39 }
 0x2c0   :  { %2139 = vmatprep.mubr.msk.f32.mxu0 %vm1155_vm2, %v1512_v17  ;;  %v1386_v46 = vpop.xlane.xlu0 %1385  ;;  %v2277_v35 = vpop.eup %2276  ;;  %v1514_v27 = vmul.f32 %v2275_v12, %v2686_v16 }
 0x2c1   :  { %2157 = vmatprep.mubr.msk.f32.mxu1 %vm1155_vm2, %v1524_v10  ;;  %v1515_v51 = vmul.f32 %v2277_v35, %v2660_v33 }
 0x2c2   :  { %2158 = vmatmul.mubr.msk.f32.vlgmr.msra.gmra.mrb[16].mxu1 %vm1155_vm2, %v1525_v20 }
 0x2c3   :  { %2140 = vmatmul.mubr.msk.f32.gmra.mrb[20].mxu0 %vm1155_vm2, %v1513_v36  ;;  %v1404_v22 = vpop.xlane.xlu1 %1403  ;;  %v2279_v53 = vpop.eup %2278 }
 0x2c4   :  { %2286 = vrcp.f32 %v1404_v22  ;;  %2142 = vmatprep.mubr.msk.f32.mxu0 %vm1155_vm2, %v1514_v27  ;;  %v1383_v44 = vpop.xlane.xlu0 %1382  ;;  %v1517_v7 = vmul.f32 %v2279_v53, %v2702_v31 }
 0x2c5   :  { %2288 = vrcp.f32 %v1413_v26 }
 0x2c6   :  { %2290 = vrcp.f32 %v1386_v46 }
 0x2c7   :  { %v2281_v45 = vpop.eup %2280  ;;  %2292 = vrcp.f32 %v1383_v44  ;;  %2143 = vmatmul.mubr.msk.f32.gmra.mrb[22].mxu0 %vm1155_vm2, %v1515_v51  ;;  %v1416_v0 = vpop.xlane.xlu1 %1415 }
 0x2c8   :  { %2294 = vrcp.f32 %v1416_v0  ;;  %v1380_v16 = vpop.xlane.xlu0 %1379  ;;  %v1516_v5 = vmul.f32 %v2281_v45, %v2712_v63  ;;  %v2283_v15 = vpop.eup %2282 }
 0x2c9   :  { %2296 = vrcp.f32 %v1380_v16  ;;  %v2285_v57 = vpop.eup %2284  ;;  %v1528_v29 = vmul.f32 %v2283_v15, %v2694_v8 }
 0x2ca   :  { %2145 = vmatprep.mubr.msk.f32.mxu0 %vm1155_vm2, %v1516_v5  ;;  %2298 = vrcp.f32 %v1419_v60  ;;  %v1527_v31 = vmul.f32 %v2285_v57, %v2710_v43 }
 0x2cb   :  { %2146 = vmatmul.mubr.msk.f32.gmra.mrb[24].mxu0 %vm1155_vm2, %v1517_v7  ;;  %v1425_v33 = vpop.xlane.xlu1 %1424 }
 0x2cc   :  { %v1389_v18 = vpop.xlane.xlu0 %1388 }
 0x2cd   :  { %2300 = vrcp.f32 %v1389_v18 }
 0x2ce   :  { %v2287_v61 = vpop.eup %2286  ;;  %2302 = vrcp.f32 %v1425_v33 }
 0x2cf   :  { %v2289_v30 = vpop.eup %2288  ;;  %v1422_v23 = vpop.xlane.xlu1 %1421  ;;  %v1526_v49 = vmul.f32 %v2287_v61, %v2730_v55 }
 0x2d0   :  { %v2291_v63 = vpop.eup %2290  ;;  %2304 = vrcp.f32 %v1422_v23  ;;  %v1392_v26 = vpop.xlane.xlu0 %1391  ;;  %v1529_v52 = vmul.f32 %v2289_v30, %v2668_v40 }
 0x2d1   :  { %v2293_v2 = vpop.eup %2292  ;;  %2306 = vrcp.f32 %v1392_v26  ;;  %2160 = vmatprep.mubr.msk.f32.mxu1 %vm1155_vm2, %v1526_v49  ;;  %v1520_v8 = vmul.f32 %v2291_v63, %v2722_v47 }
 0x2d2   :  { %v2295_v34 = vpop.eup %2294  ;;  %2161 = vmatmul.mubr.msk.f32.gmra.mrb[18].mxu1 %vm1155_vm2, %v1527_v31  ;;  %v1519_v43 = vmul.f32 %v2293_v2, %v2732_v11 }
 0x2d3   :  { %v2297_v37 = vpop.eup %2296  ;;  %2163 = vmatprep.mubr.msk.f32.mxu1 %vm1155_vm2, %v1528_v29  ;;  %v1434_v9 = vpop.xlane.xlu1 %1433  ;;  %v1530_v39 = vmul.f32 %v2295_v34, %v2740_v25 }
 0x2d4   :  { %v1395_v28 = vpop.xlane.xlu0 %1394  ;;  %v1518_v55 = vmul.f32 %v2297_v37, %v2742_v14  ;;  %v2299_v6 = vpop.eup %2298 }
 0x2d5   :  { %2308 = vrcp.f32 %v1395_v28  ;;  %v1531_v11 = vmul.f32 %v2299_v6, %v2720_v41 }
 0x2d6   :  { %2148 = vmatprep.mubr.msk.f32.mxu0 %vm1155_vm2, %v1518_v55  ;;  %2164 = vmatmul.mubr.msk.f32.gmra.mrb[20].mxu1 %vm1155_vm2, %v1529_v52  ;;  %2310 = vrcp.f32 %v1434_v9 }
 0x2d7   :  { %v2301_v50 = vpop.eup %2300  ;;  %2149 = vmatmul.mubr.msk.f32.gmra.mrb[26].mxu0 %vm1155_vm2, %v1519_v43  ;;  %2166 = vmatprep.mubr.msk.f32.mxu1 %vm1155_vm2, %v1530_v39  ;;  %v1431_v14 = vpop.xlane.xlu1 %1430 }
 0x2d8   :  { %2151 = vmatprep.mubr.msk.f32.mxu0 %vm1155_vm2, %v1520_v8  ;;  %v1521_v40 = vmul.f32 %v2301_v50, %v2751_v21  ;;  %v2303_v42 = vpop.eup %2302  ;;  %2312 = vrcp.f32 %v1431_v14 }
 0x2d9   :  { %v1533_v58 = vmul.f32 %v2303_v42, %v2749_v24 }
 0x2da   :  { %v2305_v25 = vpop.eup %2304  ;;  %2167 = vmatmul.mubr.msk.f32.gmra.mrb[22].mxu1 %vm1155_vm2, %v1531_v11 }
 0x2db   :  { %v2307_v1 = vpop.eup %2306  ;;  %2152 = vmatmul.mubr.msk.f32.gmra.mrb[28].mxu0 %vm1155_vm2, %v1521_v40  ;;  %v1428_v47 = vpop.xlane.xlu1 %1427  ;;  %v1532_v13 = vmul.f32 %v2305_v25, %v2758_v59 }
 0x2dc   :  { %2314 = vrcp.f32 %v1428_v47  ;;  %v1522_v56 = vmul.f32 %v2307_v1, %v2760_v32 }
 0x2dd   :  { %2169 = vmatprep.mubr.msk.f32.mxu1 %vm1155_vm2, %v1532_v13 }
 0x2de   :  { %2154 = vmatprep.mubr.msk.f32.mxu0 %vm1155_vm2, %v1522_v56  ;;  %2170 = vmatmul.mubr.msk.f32.gmra.mrb[24].mxu1 %vm1155_vm2, %v1533_v58 }
 0x2df   :  { %v2309_v41 = vpop.eup %2308  ;;  %v1437_v21 = vpop.xlane.xlu1 %1436 }
 0x2e0   :  { %2316 = vrcp.f32 %v1437_v21  ;;  %v1523_v17 = vmul.f32 %v2309_v41, %v2769_v54  ;;  %v2311_v59 = vpop.eup %2310 }
 0x2e1   :  { %v1536_v46 = vmul.f32 %v2311_v59, %v2767_v38 }
 0x2e2   :  { %2155 = vmatmul.mubr.msk.f32.gmra.mrb[30].mxu0 %vm1155_vm2, %v1523_v17  ;;  %v2313_v60 = vpop.eup %2312 }
 0x2e3   :  { %v1440_v12 = vpop.xlane.xlu1 %1439  ;;  %v1535_v20 = vmul.f32 %v2313_v60, %v2776_v48 }
 0x2e4   :  { %2318 = vrcp.f32 %v1440_v12 }
 0x2e6   :  { %v2315_v32 = vpop.eup %2314 }
 0x2e7   :  { %v1443_v10 = vpop.xlane.xlu1 %1442  ;;  %v1534_v24 = vmul.f32 %v2315_v32, %v2781_v4 }
 0x2e8   :  { %2320 = vrcp.f32 %v1443_v10 }
 0x2e9   :  { %2172 = vmatprep.mubr.msk.f32.mxu1 %vm1155_vm2, %v1534_v24 }
 0x2ea   :  { %v2317_v36 = vpop.eup %2316  ;;  %2173 = vmatmul.mubr.msk.f32.gmra.mrb[26].mxu1 %vm1155_vm2, %v1535_v20 }
 0x2eb   :  { %2175 = vmatprep.mubr.msk.f32.mxu1 %vm1155_vm2, %v1536_v46  ;;  %v1537_v54 = vmul.f32 %v2317_v36, %v2785_v19 }
 0x2ee   :  { %v2319_v35 = vpop.eup %2318  ;;  %2176 = vmatmul.mubr.msk.f32.gmra.mrb[28].mxu1 %vm1155_vm2, %v1537_v54 }
 0x2ef   :  { %v1538_v27 = vmul.f32 %v2319_v35, %v2789_v62 }
 0x2f1   :  { %2178 = vmatprep.mubr.msk.f32.mxu1 %vm1155_vm2, %v1538_v27 }
 0x2f2   :  { %v2321_v4 = vpop.eup %2320 }
 0x2f3   :  { %v1539_v48 = vmul.f32 %v2321_v4, %v2793_v3 }
 0x2f5   :  { %2179 = vmatmul.mubr.msk.f32.gmra.mrb[30].mxu1 %vm1155_vm2, %v1539_v48 }
 0x381   :  { %v2135_v38 = vpop.f32.mrb[16].mxu0 }
 0x382   :  { %1866 = vst.msk [vmem:[%s2991_s2 + $0x8] sm:$0xff] %vm1155_vm2, %v2135_v38  ;;  %v1706_v22 = vpop.f32.mrb[17].mxu0 }
 0x383   :  { %1865 = vst.msk [vmem:[%s2991_s2] sm:$0xff] %vm1155_vm2, %v1706_v22 }
 0x392   :  { %v2138_v19 = vpop.f32.mrb[18].mxu0 }
 0x393   :  { %1868 = vst.msk [vmem:[%s2991_s2 + $0x18] sm:$0xff] %vm1155_vm2, %v2138_v19  ;;  %v1716_v62 = vpop.f32.mrb[19].mxu0 }
 0x394   :  { %1867 = vst.msk [vmem:[%s2991_s2 + $0x10] sm:$0xff] %vm1155_vm2, %v1716_v62 }
 0x395   :  { %v2159_v3 = vpop.f32.mrb[16].mxu1 }
 0x396   :  { %v2141_v44 = vpop.f32.mrb[20].mxu0  ;;  %1882 = vst.msk [vmem:[%s2991_s2 + $0x88] sm:$0xff] %vm1155_vm2, %v2159_v3  ;;  %v1786_v51 = vpop.f32.mrb[17].mxu1 }
 0x397   :  { %1870 = vst.msk [vmem:[%s2991_s2 + $0x28] sm:$0xff] %vm1155_vm2, %v2141_v44  ;;  %v1726_v53 = vpop.f32.mrb[21].mxu0  ;;  %1881 = vst.msk [vmem:[%s2991_s2 + $0x80] sm:$0xff] %vm1155_vm2, %v1786_v51 }
 0x398   :  { %1869 = vst.msk [vmem:[%s2991_s2 + $0x20] sm:$0xff] %vm1155_vm2, %v1726_v53 }
 0x39a   :  { %v2144_v45 = vpop.f32.mrb[22].mxu0 }
 0x39b   :  { %1872 = vst.msk [vmem:[%s2991_s2 + $0x38] sm:$0xff] %vm1155_vm2, %v2144_v45  ;;  %v1736_v0 = vpop.f32.mrb[23].mxu0 }
 0x39c   :  { %1871 = vst.msk [vmem:[%s2991_s2 + $0x30] sm:$0xff] %vm1155_vm2, %v1736_v0 }
 0x39e   :  { %v2147_v16 = vpop.f32.mrb[24].mxu0 }
 0x39f   :  { %1874 = vst.msk [vmem:[%s2991_s2 + $0x48] sm:$0xff] %vm1155_vm2, %v2147_v16  ;;  %v1746_v5 = vpop.f32.mrb[25].mxu0 }
 0x3a0   :  { %1873 = vst.msk [vmem:[%s2991_s2 + $0x40] sm:$0xff] %vm1155_vm2, %v1746_v5 }
 0x3a5   :  { %v2162_v7 = vpop.f32.mrb[18].mxu1 }
 0x3a6   :  { %1884 = vst.msk [vmem:[%s2991_s2 + $0x98] sm:$0xff] %vm1155_vm2, %v2162_v7  ;;  %v1796_v33 = vpop.f32.mrb[19].mxu1 }
 0x3a7   :  { %1883 = vst.msk [vmem:[%s2991_s2 + $0x90] sm:$0xff] %vm1155_vm2, %v1796_v33 }
 0x3a9   :  { %v2165_v15 = vpop.f32.mrb[20].mxu1 }
 0x3aa   :  { %v2150_v18 = vpop.f32.mrb[26].mxu0  ;;  %1886 = vst.msk [vmem:[%s2991_s2 + $0xa8] sm:$0xff] %vm1155_vm2, %v2165_v15  ;;  %v1806_v57 = vpop.f32.mrb[21].mxu1 }
 0x3ab   :  { %1876 = vst.msk [vmem:[%s2991_s2 + $0x58] sm:$0xff] %vm1155_vm2, %v2150_v18  ;;  %v1756_v61 = vpop.f32.mrb[27].mxu0  ;;  %1885 = vst.msk [vmem:[%s2991_s2 + $0xa0] sm:$0xff] %vm1155_vm2, %v1806_v57 }
 0x3ac   :  { %1875 = vst.msk [vmem:[%s2991_s2 + $0x50] sm:$0xff] %vm1155_vm2, %v1756_v61 }
 0x3ad   :  { %v2168_v30 = vpop.f32.mrb[22].mxu1 }
 0x3ae   :  { %v2153_v23 = vpop.f32.mrb[28].mxu0  ;;  %1888 = vst.msk [vmem:[%s2991_s2 + $0xb8] sm:$0xff] %vm1155_vm2, %v2168_v30  ;;  %v1816_v49 = vpop.f32.mrb[23].mxu1 }
 0x3af   :  { %1878 = vst.msk [vmem:[%s2991_s2 + $0x68] sm:$0xff] %vm1155_vm2, %v2153_v23  ;;  %v1766_v63 = vpop.f32.mrb[29].mxu0  ;;  %1887 = vst.msk [vmem:[%s2991_s2 + $0xb0] sm:$0xff] %vm1155_vm2, %v1816_v49 }
 0x3b0   :  { %1877 = vst.msk [vmem:[%s2991_s2 + $0x60] sm:$0xff] %vm1155_vm2, %v1766_v63 }
 0x3b1   :  { %v2171_v26 = vpop.f32.mrb[24].mxu1 }
 0x3b2   :  { %1890 = vst.msk [vmem:[%s2991_s2 + $0xc8] sm:$0xff] %vm1155_vm2, %v2171_v26  ;;  %v1826_v31 = vpop.f32.mrb[25].mxu1 }
 0x3b3   :  { %1889 = vst.msk [vmem:[%s2991_s2 + $0xc0] sm:$0xff] %vm1155_vm2, %v1826_v31 }
 0x3b5   :  { %v2156_v2 = vpop.f32.mrb[30].mxu0 }
 0x3b6   :  { %1880 = vst.msk [vmem:[%s2991_s2 + $0x78] sm:$0xff] %vm1155_vm2, %v2156_v2  ;;  %v1776_v29 = vpop.f32.mrb[31].mxu0 }
 0x3b7   :  { %1879 = vst.msk [vmem:[%s2991_s2 + $0x70] sm:$0xff] %vm1155_vm2, %v1776_v29 }
 0x3bd   :  { %v2174_v34 = vpop.f32.mrb[26].mxu1 }
 0x3be   :  { %1892 = vst.msk [vmem:[%s2991_s2 + $0xd8] sm:$0xff] %vm1155_vm2, %v2174_v34  ;;  %v1836_v37 = vpop.f32.mrb[27].mxu1 }
 0x3bf   :  { %1891 = vst.msk [vmem:[%s2991_s2 + $0xd0] sm:$0xff] %vm1155_vm2, %v1836_v37 }
 0x3c1   :  { %v2177_v9 = vpop.f32.mrb[28].mxu1 }
 0x3c2   :  { %1894 = vst.msk [vmem:[%s2991_s2 + $0xe8] sm:$0xff] %vm1155_vm2, %v2177_v9  ;;  %v1846_v28 = vpop.f32.mrb[29].mxu1 }
 0x3c3   :  { %1893 = vst.msk [vmem:[%s2991_s2 + $0xe0] sm:$0xff] %vm1155_vm2, %v1846_v28 }
 0x3c8   :  { %v2180_v55 = vpop.f32.mrb[30].mxu1 }
 0x3c9   :  { %1896 = vst.msk [vmem:[%s2991_s2 + $0xf8] sm:$0xff] %vm1155_vm2, %v2180_v55  ;;  %v1856_v52 = vpop.f32.mrb[31].mxu1 }
 0x3ca   :  { %1895 = vst.msk [vmem:[%s2991_s2 + $0xf0] sm:$0xff] %vm1155_vm2, %v1856_v52 }

</bundles_post_ra>
